<compile_context>
chip_gen: v6e
topology: v6e:2x2x1
jax: 0.10.0
libtpu: 0.0.40
codegen_flags: <defaults>
</compile_context>

<pallas_src>
import jax
import jax.numpy as jnp
import numpy as np
from jax import lax
from jax.experimental import pallas as pl
from jax.experimental.pallas import tpu as pltpu


# ---------------------------------------------------------------------------
# Kernel
# ---------------------------------------------------------------------------
def spatial_attention_kernel(x_ref, band_ref, bias_ref, o_ref):
    """One batch block of: out = sigmoid(conv(cat[max_c, mean_c])) * x.

    x_ref    : (Bblk, C, H*W)  lane-dense activation block (input dtype)
    band_ref : (2*H*W, H*W)    f32 conv band matrix (boundary zeros baked in,
                               1/C folded into the "mean" half), VMEM resident
    bias_ref : (1,)            f32 conv bias (SMEM scalar)
    o_ref    : (Bblk, C, H*W)
    """
    x = x_ref[...]                                        # input dtype; no pinned f32 copy

    # Channel pooling: sublane reductions over C (1/C is folded into band).
    ch_max = jnp.max(x, axis=1).astype(jnp.float32)       # (Bblk, HW)
    ch_sum = jnp.sum(x, axis=1, dtype=jnp.float32)        # (Bblk, HW)
    pooled = jnp.concatenate([ch_max, ch_sum], axis=-1)   # (Bblk, 2*HW)

    # 7x7 "same" conv as a single band-matrix matmul on the MXU.
    conv = jnp.dot(pooled, band_ref[...], preferred_element_type=jnp.float32)
    scale = jax.nn.sigmoid(conv + bias_ref[0])            # (Bblk, HW), f32

    # Fused epilogue: broadcast multiply in the input dtype (cast scale down).
    o_ref[...] = (x * scale[:, None, :].astype(x.dtype)).astype(o_ref.dtype)


# ---------------------------------------------------------------------------
# Wrapper helpers
# ---------------------------------------------------------------------------
def _build_band_matrix(wconv, H, W, C):
    """Scatter the (1, 2, k, k) conv weights into a (2*H*W, H*W) band matrix.

    band[c*HW + q, p] = w[0, c, yq - yp + pad, xq - xp + pad]  when the tap is
    in range, else 0 (this bakes the zero padding / image boundary into the
    matrix).  1/C is folded into the "mean" half so the kernel can use sum.
    """
    k = wconv.shape[-1]
    pad = k // 2
    HW = H * W
    idx = jnp.arange(HW)
    y = idx // W
    x_ = idx % W
    dy = y[:, None] - y[None, :] + pad       # (HW_q, HW_p)
    dx = x_[:, None] - x_[None, :] + pad
    valid = (dy >= 0) & (dy < k) & (dx >= 0) & (dx < k)
    dyc = jnp.clip(dy, 0, k - 1)
    dxc = jnp.clip(dx, 0, k - 1)
    w_max = wconv[0, 0].astype(jnp.float32)                # applies to channel-max
    w_mean = (wconv[0, 1].astype(jnp.float32)) / float(C)  # applies to channel-sum
    band_max = jnp.where(valid, w_max[dyc, dxc], 0.0)
    band_mean = jnp.where(valid, w_mean[dyc, dxc], 0.0)
    return jnp.concatenate([band_max, band_mean], axis=0)  # (2*HW, HW) f32


def _tpu_budget():
    """(max_block_bytes, prefer_multi_step) by TPU generation (safe fallback)."""
    try:
        kind = jax.devices()[0].device_kind.lower()
    except Exception:
        kind = ""
    if "v5 lite" in kind or "v5e" in kind or "v5lite" in kind:
        return 2 << 20, False          # v5e: 16 MiB scoped default, least HBM BW
    if "v6" in kind:
        return 8 << 20, False          # v6e: HBM-bound, bigger blocks -> roofline
    if "v7" in kind or "7x" in kind:
        return 4 << 20, True           # v7x: 64 MiB VMEM, 2 TCs -> want >=2 steps
    return 4 << 20, False


def _pick_block_b(batch, bytes_per_b, max_block_bytes, prefer_multi_step):
    """Largest divisor of `batch` whose block fits the budget.

    On multi-TensorCore parts, prefer >= 2 grid steps so the 'parallel' axis
    can be sharded across cores; on single-core parts take the biggest block.
    """
    divisors = [d for d in range(1, batch + 1) if batch % d == 0]
    fitting = [d for d in divisors if d * bytes_per_b <= max_block_bytes]
    if not fitting:
        # Even one batch slab exceeds the budget; the caller raises the VMEM
        # limit from the actual block size.
        # TODO(synk): add a C/HW tiling fallback for very large feature maps.
        return 1
    if prefer_multi_step:
        multi = [d for d in fitting if batch // d >= 2]
        if multi:
            return max(multi)
    return max(fitting)


# ---------------------------------------------------------------------------
# Public entry point
# ---------------------------------------------------------------------------
def spatial_attention(x, wconv, bias, *, block_b=None):
    """x: (B, C, H, W); wconv: (1, 2, k, k) PyTorch OIHW; bias: (1,)."""
    B, C, H, W = x.shape
    HW = H * W
    xf = x.reshape(B, C, HW)                          # lane-dense; contiguous -> free
    band = _build_band_matrix(wconv, H, W, C)         # (2*HW, HW) f32, VMEM resident
    bias_f = bias.astype(jnp.float32)

    itemsize = xf.dtype.itemsize
    max_block_bytes, prefer_multi_step = _tpu_budget()
    if block_b is None:
        block_b = _pick_block_b(B, C * HW * itemsize, max_block_bytes, prefer_multi_step)
    num_steps = B // block_b
    grid = (num_steps,)

    # VMEM budget derived from the actual block: double-buffered in + out,
    # resident band matrix, plus slack for intermediates.
    block_bytes = block_b * C * HW * itemsize
    band_bytes = 2 * HW * HW * 4
    needed = 2 * 2 * block_bytes + 2 * band_bytes + (2 << 20)
    vmem_limit = int(min(max(needed, 16 << 20), 48 << 20))

    # Deeper input pipelining only pays off when the grid is long enough.
    x_spec_kwargs = {}
    if num_steps >= 3:
        x_spec_kwargs["pipeline_mode"] = pl.Buffered(3)
    x_spec = pl.BlockSpec((block_b, C, HW), lambda b: (b, 0, 0), **x_spec_kwargs)

    cost = pl.CostEstimate(
        flops=2 * B * (2 * HW) * HW + 4 * B * C * HW,      # band matmul + pooling/epilogue
        transcendentals=B * HW,                            # sigmoid
        bytes_accessed=2 * B * C * HW * itemsize + band_bytes,
    )

    out = pl.pallas_call(
        spatial_attention_kernel,
        out_shape=jax.ShapeDtypeStruct((B, C, HW), x.dtype),
        grid_spec=pltpu.PrefetchScalarGridSpec(
            num_scalar_prefetch=0,
            grid=grid,
            in_specs=[
                x_spec,
                pl.BlockSpec((2 * HW, HW), lambda b: (0, 0)),    # band matrix, resident
                pl.BlockSpec(memory_space=pltpu.SMEM),           # conv bias scalar
            ],
            out_specs=pl.BlockSpec((block_b, C, HW), lambda b: (b, 0, 0)),
        ),
        compiler_params=pltpu.CompilerParams(
            dimension_semantics=("parallel",),
            vmem_limit_bytes=vmem_limit,
        ),
        cost_estimate=cost,
    )(xf, band, bias_f)
    return out.reshape(B, C, H, W)


# ---------------------------------------------------------------------------
# Pure-JAX reference (mirrors the PyTorch forward)
# ---------------------------------------------------------------------------
def spatial_attention_reference(x, wconv, bias):
    ch_max = jnp.max(x, axis=1, keepdims=True)
    ch_mean = jnp.mean(x, axis=1, keepdims=True)
    pool = jnp.concatenate([ch_max, ch_mean], axis=1)
    pad = wconv.shape[-1] // 2
    conv = lax.conv_general_dilated(
        pool, wconv, window_strides=(1, 1), padding=[(pad, pad), (pad, pad)],
        dimension_numbers=("NCHW", "OIHW", "NCHW"),
    ) + bias[None, :, None, None]
    return jax.nn.sigmoid(conv) * x


if __name__ == "__main__":
    B, C, H, W = 2, 32, 16, 16
    ksize = 7

    key = jax.random.PRNGKey(0)
    kx, kc, kb = jax.random.split(key, 3)

    x = jax.random.normal(kx, (B, C, H, W), dtype=jnp.float32)
    # SpatialAttention conv: Conv2d(2, 1, 7, padding=3) with bias.
    wconv = jax.random.normal(kc, (1, 2, ksize, ksize), dtype=jnp.float32) * 0.1
    bias = jax.random.normal(kb, (1,), dtype=jnp.float32) * 0.1

    out = jax.block_until_ready(spatial_attention(x, wconv, bias))
    ref = jax.block_until_ready(spatial_attention_reference(x, wconv, bias))
    np.testing.assert_allclose(np.asarray(out), np.asarray(ref), rtol=1e-4, atol=1e-4)

    print("KERNEL_OK")
</pallas_src>

<mosaic_0001>
module attributes {stable_mosaic.version = 11 : i64} {
  func.func @spatial_attention_kernel(%arg0: i32, %arg1: memref<2x32x256xf32, #tpu.memory_space<vmem>>, %arg2: memref<512x256xf32, #tpu.memory_space<vmem>>, %arg3: memref<1xf32, #tpu.memory_space<smem>>, %arg4: memref<2x32x256xf32, #tpu.memory_space<vmem>>) attributes {dimension_semantics = [#tpu.dimension_semantics<parallel>], iteration_bounds = array<i64: 1>, scalar_prefetch = 0 : i64, scratch_operands = 0 : i64, tpu.core_type = #tpu.core_type<tc>, window_params = [{transform_indices = @transform_0, window_bounds = array<i64: 2, 32, 256>}, {pipeline_mode = #tpu.pipeline_mode<synchronous>, transform_indices = @transform_1, window_bounds = array<i64: 512, 256>}, {transform_indices = @transform_2, window_bounds = array<i64: 1>}, {transform_indices = @transform_3, window_bounds = array<i64: 2, 32, 256>}]} {
    %c0 = arith.constant 0 : index
    %c0_0 = arith.constant 0 : index
    %c0_1 = arith.constant 0 : index
    %0 = vector.load %arg1[%c0, %c0_0, %c0_1] : memref<2x32x256xf32, #tpu.memory_space<vmem>>, vector<2x32x256xf32>
    %cst = arith.constant dense<0xFF800000> : vector<2x256xf32>
    %1 = vector.multi_reduction <maximumf>, %0, %cst [1] : vector<2x32x256xf32> to vector<2x256xf32>
    %cst_2 = arith.constant dense<0.000000e+00> : vector<2x256xf32>
    %2 = vector.multi_reduction <add>, %0, %cst_2 [1] : vector<2x32x256xf32> to vector<2x256xf32>
    %3 = tpu.concatenate %1, %2 in 1 : vector<2x256xf32>, vector<2x256xf32> -> vector<2x512xf32>
    %c0_3 = arith.constant 0 : index
    %c0_4 = arith.constant 0 : index
    %4 = vector.load %arg2[%c0_3, %c0_4] : memref<512x256xf32, #tpu.memory_space<vmem>>, vector<512x256xf32>
    %cst_5 = arith.constant dense<0.000000e+00> : vector<2x256xf32>
    %5 = tpu.matmul %3, %4, %cst_5 {dimension_numbers = #tpu.dot_dimension_numbers<[1], [0], [0], [1], [0, 0, 1, 1], [], []>} : vector<2x512xf32>, vector<512x256xf32>, vector<2x256xf32> -> vector<2x256xf32>
    %c0_6 = arith.constant 0 : index
    %6 = memref.load %arg3[%c0_6] : memref<1xf32, #tpu.memory_space<smem>>
    %7 = vector.broadcast %6 : f32 to vector<2x256xf32>
    %8 = arith.addf %5, %7 : vector<2x256xf32>
    %9 = arith.negf %8 : vector<2x256xf32>
    %10 = math.exp %9 : vector<2x256xf32>
    %cst_7 = arith.constant 1.000000e+00 : f32
    %11 = vector.broadcast %cst_7 : f32 to vector<2x256xf32>
    %12 = arith.addf %11, %10 : vector<2x256xf32>
    %13 = arith.divf %11, %12 : vector<2x256xf32>
    %14 = vector.shape_cast %13 : vector<2x256xf32> to vector<2x1x256xf32>
    %15 = vector.broadcast %14 : vector<2x1x256xf32> to vector<2x32x256xf32>
    %16 = arith.mulf %0, %15 : vector<2x32x256xf32>
    %c0_8 = arith.constant 0 : index
    %c0_9 = arith.constant 0 : index
    %c0_10 = arith.constant 0 : index
    %17 = vector.load %arg4[%c0_8, %c0_9, %c0_10] : memref<2x32x256xf32, #tpu.memory_space<vmem>>, vector<2x32x256xf32>
    tpu.vector_store %arg4[%c0_8, %c0_9, %c0_10], %16 {strides = array<i32>} : memref<2x32x256xf32, #tpu.memory_space<vmem>>, vector<2x32x256xf32>,
    return
  }
  func.func @transform_0(%arg0: i32) -> (i32, i32, i32) {
    %c0_i32 = arith.constant 0 : i32
    %c0_i32_0 = arith.constant 0 : i32
    %c0_i32_1 = arith.constant 0 : i32
    return %arg0, %c0_i32, %c0_i32_0 : i32, i32, i32
  }
  func.func @transform_1(%arg0: i32) -> (i32, i32) {
    %c0_i32 = arith.constant 0 : i32
    %c0_i32_0 = arith.constant 0 : i32
    %c0_i32_1 = arith.constant 0 : i32
    return %c0_i32, %c0_i32_0 : i32, i32
  }
  func.func @transform_2(%arg0: i32) -> i32 {
    %c0_i32 = arith.constant 0 : i32
    %c0_i32_0 = arith.constant 0 : i32
    return %c0_i32 : i32
  }
  func.func @transform_3(%arg0: i32) -> (i32, i32, i32) {
    %c0_i32 = arith.constant 0 : i32
    %c0_i32_0 = arith.constant 0 : i32
    %c0_i32_1 = arith.constant 0 : i32
    return %arg0, %c0_i32, %c0_i32_0 : i32, i32, i32
  }
}

</mosaic_0001>

<bundles_post_ra>
// kernel: tpu_custom_call.1
= control target key start
LH: loop header
LB: loop body
LE: loop exit
PB: predicated region body
PF: predicated region fallthrough
CT: control target
= control target key end

     0   :  { %9 = vsyncpa [#allocation4], 0  ;;  %s741_s0 = inlined_call_operand.hbm [shape: f32[2,32,256], index: 0, kind: input, shape index: {}]   ;;  %s742_s1 = inlined_call_operand.hbm [shape: f32[512,256], index: 1, kind: input, shape index: {}]   ;;  %s743_s2 = inlined_call_operand.<no memory space> [shape: f32[1], index: 2, kind: input, shape index: {}]   ;;  %s744_s3 = inlined_call_operand.hbm [shape: f32[2,32,256], index: 3, kind: output, shape index: {}]  }
   0x1   :  { %10 = vsyncpa [#allocation7], 0 }
   0x2   :  { %11 = vsyncpa [#allocation5], 0  ;;  %s610_s12 = smov [#allocation3]  }
   0x3   :  { %s17_s13 = sshll.u32 %s610_s12, 4  ;;  %s18_s13 = int_to_ptr.vmem [resolvable:$true] %s17_s13 }
   0x4   :  { %s552_s14 = scalar_lea.vmem %s18_s13, 2048  ;;  %p557_p1 = scmp.lt.s32.totalorder %s18_s13, %s18_s13 }
   0x5   :  { %p553_p0 = scmp.ne.s32.totalorder %s18_s13, %s552_s14  ;;  %p558_p2 = scmp.lt.s32.totalorder %s552_s14, %s552_s14 }
   0x7   :  { %p559_p3 = por %p558_p2, %p557_p1 }
   0x9   :  { %p560_p4 = pnand %p559_p3, %p553_p0 }
   0xb   :  { %563 = shalt.err (!%p560_p4)
}
   0xc   :  { %s611_s15 = smov 256   ;;  %s612_s16 = smov 16  }
   0xd   :  { %23 = dma.hbm_to_vmem [thread:$0]  %s741_s0, 2048, %s18_s13, [#allocation4], %s611_s15, %s611_s15, %s612_s16  }
   0xe   :  { %s613_s19 = smov [#allocation6]  }
   0xf   :  { %s29_s20 = sshll.u32 %s613_s19, 4  ;;  %s30_s20 = int_to_ptr.vmem [resolvable:$true] %s29_s20 }
  0x10   :  { %s572_s21 = scalar_lea.vmem %s30_s20, 16384  ;;  %p577_p6 = scmp.lt.s32.totalorder %s30_s20, %s30_s20 }
  0x11   :  { %p573_p5 = scmp.ne.s32.totalorder %s30_s20, %s572_s21  ;;  %p578_p7 = scmp.lt.s32.totalorder %s572_s21, %s572_s21 }
  0x13   :  { %p579_p8 = por %p578_p7, %p577_p6 }
  0x15   :  { %p580_p9 = pnand %p579_p8, %p573_p5 }
  0x17   :  { %583 = shalt.err (!%p580_p9)
}
  0x18   :  { %35 = dma.hbm_to_vmem [thread:$0]  %s742_s1, 16384, %s30_s20, [#allocation7], %s611_s15, %s611_s15, %s612_s16  }
  0x19   :  { %604 = dma.done.wait [#allocation4], 2048  }
  0x1a   :  { %605 = vsyncadd [#allocation4], 4294965248 }
  0x1b   :  { %606 = dma.done.wait [#allocation7], 16384  }
  0x1c   :  { %607 = vsyncadd [#allocation7], 4294950912  ;;  %v180_v0 = vld [vmem:[#allocation6 + $0xf8] sm:$0xff]  ;;  %v179_v2 = vld [vmem:[#allocation6 + $0xf0] sm:$0xff]  ;;  %vm136_vm0 = vcmask 1041409  }
  0x1d   :  { %v244_v1 = vld [vmem:[#allocation6 + $0x2f8] sm:$0xff]  ;;  %279 = vmatprep.subr.mxu0 %v180_v0  ;;  %v243_v3 = vld [vmem:[#allocation6 + $0x2f0] sm:$0xff]  ;;  %v178_v4 = vld [vmem:[#allocation6 + $0xe8] sm:$0xff] }
  0x1e   :  { %350 = vmatprep.subr.mxu1 %v244_v1  ;;  %v242_v5 = vld [vmem:[#allocation6 + $0x2e8] sm:$0xff]  ;;  %280 = vmatpush1.msra.mxu0 %v179_v2  ;;  %v177_v6 = vld [vmem:[#allocation6 + $0xe0] sm:$0xff]  ;;  %v176_v8 = vld [vmem:[#allocation6 + $0xd8] sm:$0xff] }
  0x1f   :  { %351 = vmatpush1.msra.mxu1 %v243_v3  ;;  %v241_v7 = vld [vmem:[#allocation6 + $0x2e0] sm:$0xff]  ;;  %281 = vmatprep.subr.mxu0 %v178_v4  ;;  %v240_v9 = vld [vmem:[#allocation6 + $0x2d8] sm:$0xff]  ;;  %v175_v10 = vld [vmem:[#allocation6 + $0xd0] sm:$0xff] }
  0x20   :  { %352 = vmatprep.subr.mxu1 %v242_v5  ;;  %v239_v11 = vld [vmem:[#allocation6 + $0x2d0] sm:$0xff]  ;;  %282 = vmatpush1.msra.mxu0 %v177_v6  ;;  %v174_v12 = vld [vmem:[#allocation6 + $0xc8] sm:$0xff]  ;;  %v173_v14 = vld [vmem:[#allocation6 + $0xc0] sm:$0xff] }
  0x21   :  { %353 = vmatpush1.msra.mxu1 %v241_v7  ;;  %v238_v13 = vld [vmem:[#allocation6 + $0x2c8] sm:$0xff]  ;;  %283 = vmatprep.subr.mxu0 %v176_v8  ;;  %v237_v15 = vld [vmem:[#allocation6 + $0x2c0] sm:$0xff]  ;;  %v172_v16 = vld [vmem:[#allocation6 + $0xb8] sm:$0xff] }
  0x22   :  { %354 = vmatprep.subr.mxu1 %v240_v9  ;;  %284 = vmatpush1.msra.mxu0 %v175_v10  ;;  %v236_v17 = vld [vmem:[#allocation6 + $0x2b8] sm:$0xff]  ;;  %v171_v18 = vld [vmem:[#allocation6 + $0xb0] sm:$0xff]  ;;  %v170_v20 = vld [vmem:[#allocation6 + $0xa8] sm:$0xff] }
  0x23   :  { %355 = vmatpush1.msra.mxu1 %v239_v11  ;;  %285 = vmatprep.subr.mxu0 %v174_v12  ;;  %v235_v19 = vld [vmem:[#allocation6 + $0x2b0] sm:$0xff]  ;;  %v234_v21 = vld [vmem:[#allocation6 + $0x2a8] sm:$0xff]  ;;  %v169_v22 = vld [vmem:[#allocation6 + $0xa0] sm:$0xff] }
  0x24   :  { %356 = vmatprep.subr.mxu1 %v238_v13  ;;  %286 = vmatpush1.msra.mxu0 %v173_v14  ;;  %v233_v23 = vld [vmem:[#allocation6 + $0x2a0] sm:$0xff]  ;;  %v168_v24 = vld [vmem:[#allocation6 + $0x98] sm:$0xff]  ;;  %v167_v26 = vld [vmem:[#allocation6 + $0x90] sm:$0xff] }
  0x25   :  { %357 = vmatpush1.msra.mxu1 %v237_v15  ;;  %287 = vmatprep.subr.mxu0 %v172_v16  ;;  %v232_v25 = vld [vmem:[#allocation6 + $0x298] sm:$0xff]  ;;  %v231_v27 = vld [vmem:[#allocation6 + $0x290] sm:$0xff]  ;;  %v166_v28 = vld [vmem:[#allocation6 + $0x88] sm:$0xff] }
  0x26   :  { %358 = vmatprep.subr.mxu1 %v236_v17  ;;  %288 = vmatpush1.msra.mxu0 %v171_v18  ;;  %v230_v29 = vld [vmem:[#allocation6 + $0x288] sm:$0xff]  ;;  %v165_v30 = vld [vmem:[#allocation6 + $0x80] sm:$0xff]  ;;  %v164_v32 = vld [vmem:[#allocation6 + $0x78] sm:$0xff] }
  0x27   :  { %359 = vmatpush1.msra.mxu1 %v235_v19  ;;  %289 = vmatprep.subr.mxu0 %v170_v20  ;;  %v229_v31 = vld [vmem:[#allocation6 + $0x280] sm:$0xff]  ;;  %v228_v33 = vld [vmem:[#allocation6 + $0x278] sm:$0xff]  ;;  %v163_v34 = vld [vmem:[#allocation6 + $0x70] sm:$0xff] }
  0x28   :  { %360 = vmatprep.subr.mxu1 %v234_v21  ;;  %290 = vmatpush1.msra.mxu0 %v169_v22  ;;  %v227_v35 = vld [vmem:[#allocation6 + $0x270] sm:$0xff]  ;;  %v162_v36 = vld [vmem:[#allocation6 + $0x68] sm:$0xff]  ;;  %v161_v38 = vld [vmem:[#allocation6 + $0x60] sm:$0xff] }
  0x29   :  { %361 = vmatpush1.msra.mxu1 %v233_v23  ;;  %291 = vmatprep.subr.mxu0 %v168_v24  ;;  %v226_v37 = vld [vmem:[#allocation6 + $0x268] sm:$0xff]  ;;  %v225_v39 = vld [vmem:[#allocation6 + $0x260] sm:$0xff]  ;;  %v160_v40 = vld [vmem:[#allocation6 + $0x58] sm:$0xff] }
  0x2a   :  { %362 = vmatprep.subr.mxu1 %v232_v25  ;;  %292 = vmatpush1.msra.mxu0 %v167_v26  ;;  %v224_v41 = vld [vmem:[#allocation6 + $0x258] sm:$0xff]  ;;  %v159_v42 = vld [vmem:[#allocation6 + $0x50] sm:$0xff]  ;;  %v158_v44 = vld [vmem:[#allocation6 + $0x48] sm:$0xff] }
  0x2b   :  { %363 = vmatpush1.msra.mxu1 %v231_v27  ;;  %293 = vmatprep.subr.mxu0 %v166_v28  ;;  %v223_v43 = vld [vmem:[#allocation6 + $0x250] sm:$0xff]  ;;  %v222_v45 = vld [vmem:[#allocation6 + $0x248] sm:$0xff]  ;;  %v157_v46 = vld [vmem:[#allocation6 + $0x40] sm:$0xff] }
  0x2c   :  { %364 = vmatprep.subr.mxu1 %v230_v29  ;;  %294 = vmatpush1.msra.mxu0 %v165_v30  ;;  %v221_v47 = vld [vmem:[#allocation6 + $0x240] sm:$0xff]  ;;  %v156_v48 = vld [vmem:[#allocation6 + $0x38] sm:$0xff]  ;;  %v155_v50 = vld [vmem:[#allocation6 + $0x30] sm:$0xff] }
  0x2d   :  { %365 = vmatpush1.msra.mxu1 %v229_v31  ;;  %295 = vmatprep.subr.mxu0 %v164_v32  ;;  %v220_v49 = vld [vmem:[#allocation6 + $0x238] sm:$0xff]  ;;  %v219_v51 = vld [vmem:[#allocation6 + $0x230] sm:$0xff]  ;;  %v154_v52 = vld [vmem:[#allocation6 + $0x28] sm:$0xff] }
  0x2e   :  { %366 = vmatprep.subr.mxu1 %v228_v33  ;;  %296 = vmatpush1.msra.mxu0 %v163_v34  ;;  %v218_v53 = vld [vmem:[#allocation6 + $0x228] sm:$0xff]  ;;  %v153_v54 = vld [vmem:[#allocation6 + $0x20] sm:$0xff]  ;;  %v152_v56 = vld [vmem:[#allocation6 + $0x18] sm:$0xff] }
  0x2f   :  { %367 = vmatpush1.msra.mxu1 %v227_v35  ;;  %297 = vmatprep.subr.mxu0 %v162_v36  ;;  %v217_v55 = vld [vmem:[#allocation6 + $0x220] sm:$0xff]  ;;  %v216_v57 = vld [vmem:[#allocation6 + $0x218] sm:$0xff]  ;;  %v151_v58 = vld [vmem:[#allocation6 + $0x10] sm:$0xff] }
  0x30   :  { %368 = vmatprep.subr.mxu1 %v226_v37  ;;  %298 = vmatpush1.msra.mxu0 %v161_v38  ;;  %v215_v59 = vld [vmem:[#allocation6 + $0x210] sm:$0xff]  ;;  %v150_v60 = vld [vmem:[#allocation6 + $0x8] sm:$0xff]  ;;  %v149_v62 = vld [vmem:[#allocation6] sm:$0xff] }
  0x31   :  { %369 = vmatpush1.msra.mxu1 %v225_v39  ;;  %299 = vmatprep.subr.mxu0 %v160_v40  ;;  %v214_v61 = vld [vmem:[#allocation6 + $0x208] sm:$0xff]  ;;  %v213_v63 = vld [vmem:[#allocation6 + $0x200] sm:$0xff]  ;;  %v212_v0 = vld [vmem:[#allocation6 + $0x1f8] sm:$0xff] }
  0x32   :  { %370 = vmatprep.subr.mxu1 %v224_v41  ;;  %300 = vmatpush1.msra.mxu0 %v159_v42  ;;  %v276_v1 = vld [vmem:[#allocation6 + $0x3f8] sm:$0xff]  ;;  %v211_v2 = vld [vmem:[#allocation6 + $0x1f0] sm:$0xff]  ;;  %v210_v4 = vld [vmem:[#allocation6 + $0x1e8] sm:$0xff] }
  0x33   :  { %371 = vmatpush1.msra.mxu1 %v223_v43  ;;  %301 = vmatprep.subr.mxu0 %v158_v44  ;;  %v275_v3 = vld [vmem:[#allocation6 + $0x3f0] sm:$0xff]  ;;  %v274_v5 = vld [vmem:[#allocation6 + $0x3e8] sm:$0xff]  ;;  %v209_v6 = vld [vmem:[#allocation6 + $0x1e0] sm:$0xff] }
  0x34   :  { %372 = vmatprep.subr.mxu1 %v222_v45  ;;  %302 = vmatpush1.msra.mxu0 %v157_v46  ;;  %v273_v7 = vld [vmem:[#allocation6 + $0x3e0] sm:$0xff]  ;;  %v208_v8 = vld [vmem:[#allocation6 + $0x1d8] sm:$0xff]  ;;  %v207_v10 = vld [vmem:[#allocation6 + $0x1d0] sm:$0xff] }
  0x35   :  { %373 = vmatpush1.msra.mxu1 %v221_v47  ;;  %303 = vmatprep.subr.mxu0 %v156_v48  ;;  %v272_v9 = vld [vmem:[#allocation6 + $0x3d8] sm:$0xff]  ;;  %v271_v11 = vld [vmem:[#allocation6 + $0x3d0] sm:$0xff]  ;;  %v206_v12 = vld [vmem:[#allocation6 + $0x1c8] sm:$0xff] }
  0x36   :  { %374 = vmatprep.subr.mxu1 %v220_v49  ;;  %304 = vmatpush1.msra.mxu0 %v155_v50  ;;  %v270_v13 = vld [vmem:[#allocation6 + $0x3c8] sm:$0xff]  ;;  %v205_v14 = vld [vmem:[#allocation6 + $0x1c0] sm:$0xff]  ;;  %v204_v16 = vld [vmem:[#allocation6 + $0x1b8] sm:$0xff] }
  0x37   :  { %375 = vmatpush1.msra.mxu1 %v219_v51  ;;  %305 = vmatprep.subr.mxu0 %v154_v52  ;;  %v269_v15 = vld [vmem:[#allocation6 + $0x3c0] sm:$0xff]  ;;  %v268_v17 = vld [vmem:[#allocation6 + $0x3b8] sm:$0xff]  ;;  %v203_v18 = vld [vmem:[#allocation6 + $0x1b0] sm:$0xff] }
  0x38   :  { %376 = vmatprep.subr.mxu1 %v218_v53  ;;  %306 = vmatpush1.msra.mxu0 %v153_v54  ;;  %v267_v19 = vld [vmem:[#allocation6 + $0x3b0] sm:$0xff]  ;;  %v202_v20 = vld [vmem:[#allocation6 + $0x1a8] sm:$0xff]  ;;  %v201_v22 = vld [vmem:[#allocation6 + $0x1a0] sm:$0xff] }
  0x39   :  { %377 = vmatpush1.msra.mxu1 %v217_v55  ;;  %307 = vmatprep.subr.mxu0 %v152_v56  ;;  %v266_v21 = vld [vmem:[#allocation6 + $0x3a8] sm:$0xff]  ;;  %v265_v23 = vld [vmem:[#allocation6 + $0x3a0] sm:$0xff]  ;;  %v200_v24 = vld [vmem:[#allocation6 + $0x198] sm:$0xff] }
  0x3a   :  { %378 = vmatprep.subr.mxu1 %v216_v57  ;;  %308 = vmatpush1.msra.mxu0 %v151_v58  ;;  %v264_v25 = vld [vmem:[#allocation6 + $0x398] sm:$0xff]  ;;  %v199_v26 = vld [vmem:[#allocation6 + $0x190] sm:$0xff]  ;;  %v198_v28 = vld [vmem:[#allocation6 + $0x188] sm:$0xff] }
  0x3b   :  { %379 = vmatpush1.msra.mxu1 %v215_v59  ;;  %309 = vmatprep.subr.mxu0 %v150_v60  ;;  %v263_v27 = vld [vmem:[#allocation6 + $0x390] sm:$0xff]  ;;  %v262_v29 = vld [vmem:[#allocation6 + $0x388] sm:$0xff]  ;;  %v650_v31 = vld [vmem:[#allocation3 + $0x18] sm:$0xff] }
  0x3c   :  { %380 = vmatprep.subr.mxu1 %v214_v61  ;;  %310 = vmatpush1.msra.mxu0 %v149_v62  ;;  %v648_v30 = vld [vmem:[#allocation3 + $0x8] sm:$0xff]  ;;  %v197_v32 = vld [vmem:[#allocation6 + $0x180] sm:$0xff]  ;;  %v196_v38 = vld [vmem:[#allocation6 + $0x178] sm:$0xff] }
  0x3d   :  { %381 = vmatpush1.msra.mxu1 %v213_v63  ;;  %311 = vmatprep.subr.mxu0 %v212_v0  ;;  %v261_v33 = vld [vmem:[#allocation6 + $0x380] sm:$0xff]  ;;  %v652_v34 = vld [vmem:[#allocation3 + $0x28] sm:$0xff]  ;;  %v69_v36 = vmax.f32 %v648_v30, %v650_v31  ;;  %v105_v37 = vadd.f32 %v650_v31, %v648_v30  ;;  %v260_v39 = vld [vmem:[#allocation6 + $0x378] sm:$0xff] }
  0x3e   :  { %382 = vmatprep.subr.mxu1 %v276_v1  ;;  %312 = vmatpush2.msra.mxu0 %v211_v2  ;;  %v654_v35 = vld [vmem:[#allocation3 + $0x48] sm:$0xff]  ;;  %v660_v40 = vld [vmem:[#allocation3 + $0x38] sm:$0xff]  ;;  %v195_v43 = vld [vmem:[#allocation6 + $0x170] sm:$0xff] }
  0x3f   :  { %383 = vmatpush2.msra.mxu1 %v275_v3  ;;  %313 = vmatprep.subr.mxu0 %v210_v4  ;;  %v662_v41 = vld [vmem:[#allocation3 + $0x58] sm:$0xff]  ;;  %v664_v42 = vld [vmem:[#allocation3 + $0x68] sm:$0xff]  ;;  %v259_v44 = vld [vmem:[#allocation6 + $0x370] sm:$0xff]  ;;  %v70_v45 = vmax.f32 %v69_v36, %v652_v34  ;;  %v106_v47 = vadd.f32 %v105_v37, %v652_v34 }
  0x40   :  { %384 = vmatprep.subr.mxu1 %v274_v5  ;;  %314 = vmatpush2.msra.mxu0 %v209_v6  ;;  %v87_v46 = vmax.f32 %v654_v35, %v662_v41  ;;  %v670_v48 = vld [vmem:[#allocation3] sm:$0xff]  ;;  %v672_v49 = vld [vmem:[#allocation3 + $0x10] sm:$0xff]  ;;  %v674_v50 = vld [vmem:[#allocation3 + $0x78] sm:$0xff]  ;;  %v123_v51 = vadd.f32 %v662_v41, %v654_v35 }
  0x41   :  { %385 = vmatpush2.msra.mxu1 %v273_v7  ;;  %315 = vmatprep.subr.mxu0 %v208_v8  ;;  %v678_v52 = vld [vmem:[#allocation3 + $0x20] sm:$0xff]  ;;  %v60_v54 = vmax.f32 %v670_v48, %v672_v49  ;;  %v96_v55 = vadd.f32 %v672_v49, %v670_v48  ;;  %v71_v56 = vmax.f32 %v70_v45, %v660_v40  ;;  %v689_v59 = vld [vmem:[#allocation3 + $0x30] sm:$0xff]  ;;  %v194_v62 = vld [vmem:[#allocation6 + $0x168] sm:$0xff] }
  0x42   :  { %386 = vmatprep.subr.mxu1 %v272_v9  ;;  %316 = vmatpush2.msra.mxu0 %v207_v10  ;;  %v680_v53 = vld [vmem:[#allocation3 + $0x40] sm:$0xff]  ;;  %v88_v57 = vmax.f32 %v87_v46, %v664_v42  ;;  %v107_v58 = vadd.f32 %v106_v47, %v660_v40  ;;  %v691_v60 = vld [vmem:[#allocation3 + $0x50] sm:$0xff]  ;;  %v258_v63 = vld [vmem:[#allocation6 + $0x368] sm:$0xff]  ;;  %v124_v0 = vadd.f32 %v123_v51, %v664_v42 }
  0x43   :  { %387 = vmatpush2.msra.mxu1 %v271_v11  ;;  %317 = vmatprep.subr.mxu0 %v206_v12  ;;  %v693_v61 = vld [vmem:[#allocation3 + $0x60] sm:$0xff]  ;;  %v61_v1 = vmax.f32 %v60_v54, %v678_v52  ;;  %v78_v2 = vmax.f32 %v680_v53, %v691_v60  ;;  %v72_v5 = vrot.slane %v71_v56, 4  ;;  %v700_v8 = vld [vmem:[#allocation3 + $0x70] sm:$0xff]  ;;  %v97_v9 = vadd.f32 %v96_v55, %v678_v52  ;;  %v192_v10 = vld [vmem:[#allocation6 + $0x158] sm:$0xff] }
  0x44   :  { %388 = vmatprep.subr.mxu1 %v270_v13  ;;  %318 = vmatpush2.msra.mxu0 %v205_v14  ;;  %v193_v3 = vld [vmem:[#allocation6 + $0x160] sm:$0xff]  ;;  %v89_v6 = vmax.f32 %v88_v57, %v674_v50  ;;  %v108_v7 = vrot.slane %v107_v58, 4  ;;  %v256_v11 = vld [vmem:[#allocation6 + $0x358] sm:$0xff]  ;;  %v125_v12 = vadd.f32 %v124_v0, %v674_v50  ;;  %v187_v46 = vld [vmem:[#allocation6 + $0x130] sm:$0xff] }
  0x45   :  { %389 = vmatpush2.msra.mxu1 %v269_v15  ;;  %319 = vmatprep.subr.mxu0 %v204_v16  ;;  %v257_v4 = vld [vmem:[#allocation6 + $0x360] sm:$0xff]  ;;  %v62_v13 = vmax.f32 %v61_v1, %v689_v59  ;;  %v79_v14 = vmax.f32 %v78_v2, %v693_v61  ;;  %v191_v15 = vld [vmem:[#allocation6 + $0x150] sm:$0xff]  ;;  %v188_v37 = vld [vmem:[#allocation6 + $0x138] sm:$0xff] }
  0x46   :  { %390 = vmatprep.subr.mxu1 %v268_v17  ;;  %320 = vmatpush2.msra.mxu0 %v203_v18  ;;  %v255_v16 = vld [vmem:[#allocation6 + $0x350] sm:$0xff]  ;;  %v73_v17 = vmax.f32 %v71_v56, %v72_v5  ;;  %v90_v18 = vrot.slane %v89_v6, 4  ;;  %v186_v57 = vld [vmem:[#allocation6 + $0x128] sm:$0xff]  ;;  %v185_v2 = vld [vmem:[#allocation6 + $0x120] sm:$0xff] }
  0x47   :  { %391 = vmatpush2.msra.mxu1 %v267_v19  ;;  %321 = vmatprep.subr.mxu0 %v202_v20  ;;  %v109_v19 = vadd.f32 %v108_v7, %v107_v58  ;;  %v98_v20 = vadd.f32 %v97_v9, %v689_v59  ;;  %v251_v47 = vld [vmem:[#allocation6 + $0x330] sm:$0xff]  ;;  %v250_v58 = vld [vmem:[#allocation6 + $0x328] sm:$0xff]  ;;  %v184_v9 = vld [vmem:[#allocation6 + $0x118] sm:$0xff] }
  0x48   :  { %392 = vmatprep.subr.mxu1 %v266_v21  ;;  %322 = vmatpush2.msra.mxu0 %v201_v22  ;;  %v190_v21 = vld [vmem:[#allocation6 + $0x148] sm:$0xff] }
  0x49   :  { %393 = vmatpush2.msra.mxu1 %v265_v23  ;;  %323 = vmatprep.subr.mxu0 %v200_v24  ;;  %v254_v22 = vld [vmem:[#allocation6 + $0x348] sm:$0xff]  ;;  %v126_v23 = vrot.slane %v125_v12, 4  ;;  %v63_v24 = vrot.slane %v62_v13, 4  ;;  %v99_v36 = vrot.slane %v98_v20, 4 }
  0x4a   :  { %394 = vmatprep.subr.mxu1 %v264_v25  ;;  %324 = vmatpush2.msra.mxu0 %v199_v26  ;;  %v80_v25 = vmax.f32 %v79_v14, %v700_v8  ;;  %v114_v26 = vadd.f32 %v691_v60, %v680_v53 }
  0x4b   :  { %395 = vmatpush2.msra.mxu1 %v263_v27  ;;  %325 = vmatprep.subr.mxu0 %v198_v28  ;;  %v189_v27 = vld [vmem:[#allocation6 + $0x140] sm:$0xff]  ;;  %v100_v56 = vadd.f32 %v99_v36, %v98_v20 }
  0x4c   :  { %396 = vmatprep.subr.mxu1 %v262_v29  ;;  %326 = vmatpush2.msra.mxu0 %v197_v32  ;;  %v253_v28 = vld [vmem:[#allocation6 + $0x340] sm:$0xff]  ;;  %v74_v29 = vrot.slane %v73_v17, 2  ;;  %v91_v32 = vmax.f32 %v89_v6, %v90_v18  ;;  %v115_v45 = vadd.f32 %v114_v26, %v693_v61 }
  0x4d   :  { %397 = vmatpush2.msra.mxu1 %v261_v33  ;;  %327 = vmatprep.subr.mxu0 %v196_v38  ;;  %v110_v33 = vrot.slane %v109_v19, 2  ;;  %v252_v38 = vld [vmem:[#allocation6 + $0x338] sm:$0xff]  ;;  %v101_v7 = vrot.slane %v100_v56, 2 }
  0x4e   :  { %398 = vmatprep.subr.mxu1 %v260_v39  ;;  %328 = vmatpush2.msra.mxu0 %v195_v43  ;;  %v127_v39 = vadd.f32 %v126_v23, %v125_v12  ;;  %v64_v43 = vmax.f32 %v62_v13, %v63_v24  ;;  %v75_v51 = vmax.f32 %v73_v17, %v74_v29  ;;  %v92_v54 = vrot.slane %v91_v32, 2 }
  0x4f   :  { %399 = vmatpush2.msra.mxu1 %v259_v44  ;;  %329 = vmatprep.subr.mxu0 %v194_v62  ;;  %v81_v44 = vrot.slane %v80_v25, 4  ;;  %v111_v55 = vadd.f32 %v110_v33, %v109_v19  ;;  %v116_v1 = vadd.f32 %v115_v45, %v700_v8  ;;  %v102_v20 = vadd.f32 %v101_v7, %v100_v56 }
  0x50   :  { %400 = vmatprep.subr.mxu1 %v258_v63  ;;  %330 = vmatpush2.msra.mxu0 %v193_v3  ;;  %v128_v62 = vrot.slane %v127_v39, 2  ;;  %v65_v63 = vrot.slane %v64_v43, 2  ;;  %v249_v3 = vld [vmem:[#allocation6 + $0x320] sm:$0xff]  ;;  %v93_v5 = vmax.f32 %v91_v32, %v92_v54  ;;  %v278_v56 = vstv %s743_s2  ;;  %s615_s2 = smov [#allocation8]  }
  0x51   :  { %401 = vmatpush2.msra.mxu1 %v257_v4  ;;  %331 = vmatprep.subr.mxu0 %v192_v10  ;;  %v82_v0 = vmax.f32 %v80_v25, %v81_v44  ;;  %v76_v4 = vrot.slane %v75_v51, 1  ;;  %v112_v6 = vrot.slane %v111_v55, 1  ;;  %v248_v10 = vld [vmem:[#allocation6 + $0x318] sm:$0xff]  ;;  %v117_v14 = vrot.slane %v116_v1, 4  ;;  %v245_v32 = vld [vmem:[#allocation6 + $0x300] sm:$0xff]  ;;  %s515_s24 = sshll.u32 %s615_s2, 4  ;;  %s516_s24 = int_to_ptr.vmem [resolvable:$true] %s515_s24 }
  0x52   :  { %402 = vmatprep.subr.mxu1 %v256_v11  ;;  %332 = vmatpush2.msra.mxu0 %v191_v15  ;;  %v129_v11 = vadd.f32 %v128_v62, %v127_v39  ;;  %v66_v12 = vmax.f32 %v64_v43, %v65_v63  ;;  %v183_v15 = vld [vmem:[#allocation6 + $0x110] sm:$0xff]  ;;  %v94_v18 = vrot.slane %v93_v5, 1  ;;  %v103_v29 = vrot.slane %v102_v20, 1  ;;  %s584_s25 = scalar_lea.vmem %s516_s24, 2048  ;;  %p589_p11 = scmp.lt.s32.totalorder %s516_s24, %s516_s24 }
  0x53   :  { %403 = vmatpush2.msra.mxu1 %v255_v16  ;;  %333 = vmatprep.subr.mxu0 %v190_v21  ;;  %v83_v13 = vrot.slane %v82_v0, 2  ;;  %v247_v16 = vld [vmem:[#allocation6 + $0x310] sm:$0xff]  ;;  %v77_v17 = vmax.f32 %v75_v51, %v76_v4  ;;  %v113_v19 = vadd.f32 %v112_v6, %v111_v55  ;;  %v182_v21 = vld [vmem:[#allocation6 + $0x108] sm:$0xff]  ;;  %v118_v26 = vadd.f32 %v117_v14, %v116_v1  ;;  %p585_p10 = scmp.ne.s32.totalorder %s516_s24, %s584_s25  ;;  %p590_p12 = scmp.lt.s32.totalorder %s584_s25, %s584_s25 }
  0x54   :  { %404 = vmatprep.subr.mxu1 %v254_v22  ;;  %334 = vmatpush2.msra.mxu0 %v189_v27  ;;  %v246_v22 = vld [vmem:[#allocation6 + $0x308] sm:$0xff]  ;;  %v130_v23 = vrot.slane %v129_v11, 1  ;;  %v67_v24 = vrot.slane %v66_v12, 1  ;;  %v181_v27 = vld [vmem:[#allocation6 + $0x100] sm:$0xff] }
  0x55   :  { %405 = vmatpush2.msra.mxu1 %v253_v28  ;;  %335 = vmatprep.subr.mxu0 %v188_v37  ;;  %v84_v25 = vmax.f32 %v82_v0, %v83_v13  ;;  %v95_v28 = vmax.f32 %v93_v5, %v94_v18  ;;  %v439_v13 = vlaneseq  ;;  %p591_p13 = por %p590_p12, %p589_p11 }
  0x56   :  { %406 = vmatprep.subr.mxu1 %v252_v38  ;;  %336 = vmatpush2.msra.mxu0 %v187_v46  ;;  %v131_v33 = vadd.f32 %v130_v23, %v129_v11  ;;  %v68_v36 = vmax.f32 %v66_v12, %v67_v24  ;;  %v119_v38 = vrot.slane %v118_v26, 2  ;;  %v614_v11 = vmov 1966171168  }
  0x57   :  { %407 = vmatpush2.msra.mxu1 %v251_v47  ;;  %337 = vmatprep.subr.mxu0 %v186_v57  ;;  %v85_v37 = vrot.slane %v84_v25, 1  ;;  %v138_v39 = vsel %vm136_vm0, %v95_v28, %v77_v17  ;;  %v104_v47 = vadd.f32 %v103_v29, %v102_v20  ;;  %v437_v12 = vunpack.c.l.s4 %v614_v11  ;;  %p592_p0 = pnand %p591_p13, %p585_p10 }
  0x58   :  { %408 = vmatprep.subr.mxu1 %v250_v58  ;;  %338 = vmatpush2.msra.mxu0 %v185_v2  ;;  %v146_v43 = vsel %vm136_vm0, %v131_v33, %v113_v19  ;;  %v120_v45 = vadd.f32 %v119_v38, %v118_v26 }
  0x59   :  { %409 = vmatpush2.msra.mxu1 %v249_v3  ;;  %339 = vmatprep.subr.mxu0 %v184_v9  ;;  %v86_v44 = vmax.f32 %v84_v25, %v85_v37  ;;  %v438_v14 = vunpack.c.0.s8 %v437_v12 }
  0x5a   :  { %410 = vmatprep.subr.mxu1 %v248_v10  ;;  %340 = vmatpush2.msra.mxu0 %v183_v15  ;;  %v121_v51 = vrot.slane %v120_v45, 1  ;;  %v440_v15 = vshrl.u32 %v439_v13, 7 }
  0x5b   :  { %411 = vmatpush2.msra.mxu1 %v247_v16  ;;  %341 = vmatprep.subr.mxu0 %v182_v21  ;;  %v137_v46 = vsel %vm136_vm0, %v86_v44, %v68_v36 }
  0x5c   :  { %412 = vmatprep.subr.mxu1 %v246_v22  ;;  %342 = vmatpush2.msra.mxu0 %v181_v27  ;;  %v122_v54 = vadd.f32 %v121_v51, %v120_v45  ;;  %v441_v17 = vsub.s32 %v438_v14, %v440_v15  ;;  %v460_v21 = vsub.s32 0, %v440_v15  ;;  %v464_v22 = vsub.s32 1, %v440_v15 }
  0x5d   :  { %343 = vmatprep.mubr.f32.mxu0 %v138_v39  ;;  %413 = vmatpush2.msra.mxu1 %v245_v32 }
  0x5e   :  { %414 = vmatprep.mubr.f32.mxu1 %v146_v43  ;;  %344 = vmatmul.mubr.f32.vlgmr.msra.gmra.mxu0 %v137_v46  ;;  %v145_v55 = vsel %vm136_vm0, %v122_v54, %v104_v47 }
  0x5f   :  { %415 = vmatmul.mubr.f32.vlgmr.msra.gmra.mxu1 %v145_v55 }
 0x11e   :  { %v345_v57 = vpop.f32.mrf.mxu0 }
 0x11f   :  { %v346_v58 = vadd.f32 %v345_v57, %v278_v56  ;;  %v416_v0 = vpop.f32.mrf.mxu1 }
 0x120   :  { %v347_v62 = vpop.f32.mrf.mxu0 }
 0x121   :  { %v348_v63 = vadd.f32 %v347_v62, %v278_v56  ;;  %v417_v1 = vadd.f32 %v416_v0, %v346_v58  ;;  %v418_v2 = vpop.f32.mrf.mxu1 }
 0x123   :  { %v528_v3 = vmul.f32 -1.442695, %v417_v1  ;;  %v419_v4 = vadd.f32 %v418_v2, %v348_v63 }
 0x125   :  { %536 = vpow2.f32 %v528_v3  ;;  %v529_v5 = vmul.f32 -1.442695, %v419_v4 }
 0x127   :  { %538 = vpow2.f32 %v529_v5 }
 0x132   :  { %v537_v6 = vpop.eup %536 }
 0x133   :  { %v427_v7 = vadd.f32 1.0, %v537_v6 }
 0x134   :  { %v539_v9 = vpop.eup %538 }
 0x135   :  { %v428_v10 = vadd.f32 1.0, %v539_v9  ;;  %540 = vrcp.f32 %v427_v7 }
 0x137   :  { %542 = vrcp.f32 %v428_v10 }
 0x142   :  { %v541_v16 = vpop.eup %540 }
 0x144   :  { %v543_v18 = vpop.eup %542 }
 0x145   :  { %v435_v19 = vcombine.low %v541_v16, %v543_v18 }
 0x147   :  { %v442_v20 = vrot.slane %v435_v19, %v441_v17 }
 0x149   :  { %v443_v23 = vcombine.high %v442_v20, %v442_v20  ;;  %v450_v24 = vrot.slane %v442_v20, %v441_v17 }
 0x14b   :  { %v457_v25 = vrot.slane %v443_v23, %v441_v17  ;;  %v461_v26 = vrot.slane %v450_v24, %v460_v21  ;;  %v465_v27 = vrot.slane %v450_v24, %v464_v22 }
 0x14d   :  { %v469_v28 = vrot.slane %v457_v25, %v460_v21  ;;  %v473_v29 = vrot.slane %v457_v25, %v464_v22  ;;  %v478_v32 = vmul.f32 %v461_v26, %v670_v48  ;;  %v479_v33 = vmul.f32 %v465_v27, %v648_v30 }
 0x14e   :  { %v480_v36 = vmul.f32 %v461_v26, %v672_v49  ;;  %v481_v37 = vmul.f32 %v465_v27, %v650_v31  ;;  %v482_v38 = vmul.f32 %v461_v26, %v678_v52  ;;  %v483_v39 = vmul.f32 %v465_v27, %v652_v34 }
 0x14f   :  { %v484_v43 = vmul.f32 %v461_v26, %v689_v59  ;;  %v485_v44 = vmul.f32 %v465_v27, %v660_v40  ;;  %v486_v45 = vmul.f32 %v469_v28, %v680_v53  ;;  %v487_v48 = vmul.f32 %v473_v29, %v654_v35  ;;  %494 = vst [vmem:[#allocation8] sm:$0xff] %v478_v32 }
 0x150   :  { %495 = vst [vmem:[#allocation8 + $0x8] sm:$0xff] %v479_v33  ;;  %v488_v30 = vmul.f32 %v469_v28, %v691_v60  ;;  %v489_v31 = vmul.f32 %v473_v29, %v662_v41  ;;  %v490_v49 = vmul.f32 %v469_v28, %v693_v61  ;;  %v491_v34 = vmul.f32 %v473_v29, %v664_v42 }
 0x151   :  { %496 = vst [vmem:[#allocation8 + $0x10] sm:$0xff] %v480_v36  ;;  %497 = vst [vmem:[#allocation8 + $0x18] sm:$0xff] %v481_v37  ;;  %v492_v40 = vmul.f32 %v469_v28, %v700_v8  ;;  %v493_v52 = vmul.f32 %v473_v29, %v674_v50 }
 0x152   :  { %498 = vst [vmem:[#allocation8 + $0x20] sm:$0xff] %v482_v38  ;;  %499 = vst [vmem:[#allocation8 + $0x28] sm:$0xff] %v483_v39 }
 0x153   :  { %500 = vst [vmem:[#allocation8 + $0x30] sm:$0xff] %v484_v43  ;;  %501 = vst [vmem:[#allocation8 + $0x38] sm:$0xff] %v485_v44 }
 0x154   :  { %502 = vst [vmem:[#allocation8 + $0x40] sm:$0xff] %v486_v45  ;;  %503 = vst [vmem:[#allocation8 + $0x48] sm:$0xff] %v487_v48 }
 0x155   :  { %504 = vst [vmem:[#allocation8 + $0x50] sm:$0xff] %v488_v30  ;;  %505 = vst [vmem:[#allocation8 + $0x58] sm:$0xff] %v489_v31 }
 0x156   :  { %506 = vst [vmem:[#allocation8 + $0x60] sm:$0xff] %v490_v49  ;;  %507 = vst [vmem:[#allocation8 + $0x68] sm:$0xff] %v491_v34 }
 0x157   :  { %508 = vst [vmem:[#allocation8 + $0x70] sm:$0xff] %v492_v40  ;;  %509 = vst [vmem:[#allocation8 + $0x78] sm:$0xff] %v493_v52 }
 0x158   :  { %595 = shalt.err (!%p592_p0)
}
 0x159   :  { %521 = dma.vmem_to_hbm [thread:$0]  %s516_s24, 2048, %s744_s3, [#allocation5], %s611_s15, %s611_s15, %s612_s16  }
 0x15a   :  { %608 = dma.done.wait [#allocation5], 2048  }
 0x15b   :  { %609 = vsyncadd [#allocation5], 4294965248 }
 0x15c   :  { %525 = vsyncpa [#allocation4], 1 }
 0x15d   :  { %526 = vsyncpa [#allocation7], 1 }
 0x15e   :  { %527 = vsyncpa [#allocation5], 1 }

</bundles_post_ra>
